<compile_context>
chip_gen: v7x
topology: tpu7x:2x2x1
jax: 0.10.0
libtpu: 0.0.40
codegen_flags: <defaults>
</compile_context>

<pallas_src>
import math

import jax
import jax.numpy as jnp
from jax.experimental import pallas as pl
from jax.experimental.pallas import tpu as pltpu


def _cmvn_kernel_norm_var(x_ref, mean_ref, istd_ref, o_ref):
    # x_ref: (tile_r, lanes) tile of the folded input
    # mean_ref / istd_ref: (1, lanes) float32 stats, plain sublane broadcast
    x = x_ref[...].astype(jnp.float32)
    o_ref[...] = ((x - mean_ref[...]) * istd_ref[...]).astype(o_ref.dtype)


def _cmvn_kernel_no_var(x_ref, mean_ref, o_ref):
    x = x_ref[...].astype(jnp.float32)
    o_ref[...] = (x - mean_ref[...]).astype(o_ref.dtype)


def _round_up(a: int, b: int) -> int:
    return (a + b - 1) // b * b


def global_cmvn(x: jax.Array, mean: jax.Array, istd: jax.Array,
                norm_var: bool = True, out_dtype=None,
                tile_rows: int | None = None) -> jax.Array:
    """Pallas implementation of GlobalCMVN.forward.

    Args:
      x:    (B, T, D) input features.
      mean: (D,) mean stats (used in float32 inside the kernel).
      istd: (D,) inverse std (used in float32 inside the kernel).
      norm_var: multiply by istd after subtracting the mean.
      out_dtype: optional output dtype override (e.g. bf16 for bf16 inputs).
                 Defaults to PyTorch-style dtype promotion.
      tile_rows: optional override of the folded-row tile size (testing).
    Returns:
      (B, T, D) normalized features.
    """
    B, T, D = x.shape
    assert mean.shape == (D,) and istd.shape == (D,)

    if out_dtype is None:
        if norm_var:
            out_dtype = jnp.result_type(x.dtype, mean.dtype, istd.dtype)
        else:
            out_dtype = jnp.result_type(x.dtype, mean.dtype)
    out_dtype = jnp.dtype(out_dtype)

    # Fold k consecutive rows into the lane axis so the last dim is a multiple
    # of 128 (lane-dense vregs, unmasked vst). E.g. D=32 -> k=4, D=80 -> k=8.
    k = 128 // math.gcd(D, 128)
    lanes = k * D

    N = B * T                      # raw rows
    M = pl.cdiv(N, k)              # folded rows

    SUB = 16                       # sublane multiple valid for f32 and bf16
    in_item = jnp.dtype(x.dtype).itemsize
    out_item = out_dtype.itemsize

    if tile_rows is not None:
        tile_r = int(tile_rows)
    else:
        # ~4 MiB of input per tile; 2*(in + out) double-buffered tiles <= 24 MiB
        # so v7x (64 MiB physical / 32 MiB scoped VMEM) is always safe.
        rows_from_in = (4 * 1024 * 1024) // (lanes * in_item)
        rows_from_vmem = (24 * 1024 * 1024) // (2 * lanes * (in_item + out_item))
        tile_r = min(rows_from_in, rows_from_vmem)
        # Keep >= ~4 grid steps when there is enough data (DMA pipeline overlap
        # and megacore sharding on v7x).
        if M > 4 * SUB:
            tile_r = min(tile_r, pl.cdiv(M, 4))
        tile_r = max(SUB, (tile_r // SUB) * SUB)

    if M <= tile_r:
        # Single block covering the whole folded array: block dim == full array
        # dim is always a legal tile shape, no masking needed.
        tile_r = M
        steps = 1
    else:
        steps = pl.cdiv(M, tile_r)
        # Prefer an even step count so the two v7x TensorCores stay balanced
        # (best effort; harmless elsewhere).
        if steps % 2 == 1:
            steps += 1
            tile_r = max(SUB, _round_up(pl.cdiv(M, steps), SUB))
            steps = pl.cdiv(M, tile_r)

    # Only pad to a multiple of k (at most k-1 rows); skipped when N % k == 0.
    # The ragged last grid block is handled by Pallas masking, not padding.
    x_flat = x.reshape(N, D)
    pad_rows = M * k - N
    if pad_rows:
        x_flat = jnp.pad(x_flat, ((0, pad_rows), (0, 0)))
    x_folded = x_flat.reshape(M, lanes)

    # Stats tiled k times to match the folded lane layout; kept in float32.
    mean_l = jnp.tile(mean.astype(jnp.float32), k).reshape(1, lanes)
    istd_l = jnp.tile(istd.astype(jnp.float32), k).reshape(1, lanes)

    x_spec = pl.BlockSpec((tile_r, lanes), lambda i: (i, 0))
    stat_spec = pl.BlockSpec((1, lanes), lambda i: (0, 0))
    out_spec = pl.BlockSpec((tile_r, lanes), lambda i: (i, 0))

    if norm_var:
        kernel = _cmvn_kernel_norm_var
        in_specs = [x_spec, stat_spec, stat_spec]
        args = (x_folded, mean_l, istd_l)
    else:
        kernel = _cmvn_kernel_no_var
        in_specs = [x_spec, stat_spec]
        args = (x_folded, mean_l)

    # Explicit VMEM limit: below v7x's 64 MiB physical, above v5e's 16 MiB
    # scoped default so large tiles compile on all generations.
    pipelined_bytes = 2 * tile_r * lanes * (in_item + out_item)
    vmem_limit = min(48 * 1024 * 1024,
                     max(32 * 1024 * 1024, (pipelined_bytes * 3) // 2))

    out_folded = pl.pallas_call(
        kernel,
        out_shape=jax.ShapeDtypeStruct((M, lanes), out_dtype),
        grid_spec=pltpu.PrefetchScalarGridSpec(
            num_scalar_prefetch=0,
            grid=(steps,),
            in_specs=in_specs,
            out_specs=out_spec,
        ),
        compiler_params=pltpu.CompilerParams(
            dimension_semantics=("parallel",),
            vmem_limit_bytes=int(vmem_limit),
        ),
    )(*args)

    # Unfold back to (B, T, D); reshapes are free, the slice only exists when
    # a (tiny, < k rows) pad was applied.
    if pad_rows:
        return out_folded.reshape(M * k, D)[:N].reshape(B, T, D)
    return out_folded.reshape(B, T, D)


if __name__ == "__main__":
    key = jax.random.PRNGKey(0)
    kx, km, ks = jax.random.split(key, 3)

    # Primary shape consistent with the module: (batch, max_len, feat_dim).
    B, T, D = 2, 8, 32
    x = jax.random.normal(kx, (B, T, D), dtype=jnp.float32)
    mean = jax.random.normal(km, (D,), dtype=jnp.float32)
    istd = 1.0 / (0.5 + jax.random.uniform(ks, (D,), dtype=jnp.float32))

    out = jax.block_until_ready(global_cmvn(x, mean, istd, norm_var=True))
    ref = (x - mean[None, None, :]) * istd[None, None, :]
    assert out.shape == (B, T, D) and out.dtype == x.dtype
    assert jnp.allclose(out, ref, atol=1e-6, rtol=1e-6)

    out2 = jax.block_until_ready(global_cmvn(x, mean, istd, norm_var=False))
    assert jnp.allclose(out2, x - mean[None, None, :], atol=1e-6, rtol=1e-6)

    # Non-divisible folding path: (B*T) % k != 0 -> tiny residual pad only.
    B2, T2, D2 = 2, 7, 80      # k = 8, N = 14
    x2 = jax.random.normal(kx, (B2, T2, D2), dtype=jnp.float32)
    m2 = jax.random.normal(km, (D2,), dtype=jnp.float32)
    s2 = 1.0 / (0.5 + jax.random.uniform(ks, (D2,), dtype=jnp.float32))
    o2 = jax.block_until_ready(global_cmvn(x2, m2, s2))
    r2 = (x2 - m2[None, None, :]) * s2[None, None, :]
    assert jnp.allclose(o2, r2, atol=1e-6, rtol=1e-6)

    # Multi-step grid with a ragged (masked) last block, bf16 input with the
    # bf16 output override (bandwidth saver).
    B3, T3, D3 = 2, 80, 32     # k = 4 -> 40 folded rows, tile 16 -> 3 steps
    x3 = jax.random.normal(kx, (B3, T3, D3), dtype=jnp.bfloat16)
    m3 = jax.random.normal(km, (D3,), dtype=jnp.float32)
    s3 = 1.0 / (0.5 + jax.random.uniform(ks, (D3,), dtype=jnp.float32))
    o3 = jax.block_until_ready(
        global_cmvn(x3, m3, s3, out_dtype=jnp.bfloat16, tile_rows=16))
    r3 = (x3.astype(jnp.float32) - m3[None, None, :]) * s3[None, None, :]
    assert o3.dtype == jnp.bfloat16
    assert jnp.allclose(o3.astype(jnp.float32), r3, atol=5e-2, rtol=2e-2)

    print("KERNEL_OK")
</pallas_src>

<mosaic_0001>
module attributes {stable_mosaic.version = 11 : i64} {
  func.func @_cmvn_kernel_norm_var(%arg0: i32, %arg1: memref<4x128xf32, #tpu.memory_space<vmem>>, %arg2: memref<1x128xf32, #tpu.memory_space<vmem>>, %arg3: memref<1x128xf32, #tpu.memory_space<vmem>>, %arg4: memref<4x128xf32, #tpu.memory_space<vmem>>) attributes {dimension_semantics = [#tpu.dimension_semantics<parallel>], iteration_bounds = array<i64: 1>, scalar_prefetch = 0 : i64, scratch_operands = 0 : i64, tpu.core_type = #tpu.core_type<tc>, window_params = [{transform_indices = @transform_0, window_bounds = array<i64: 4, 128>}, {pipeline_mode = #tpu.pipeline_mode<synchronous>, transform_indices = @transform_1, window_bounds = array<i64: 1, 128>}, {pipeline_mode = #tpu.pipeline_mode<synchronous>, transform_indices = @transform_2, window_bounds = array<i64: 1, 128>}, {transform_indices = @transform_3, window_bounds = array<i64: 4, 128>}]} {
    %c0 = arith.constant 0 : index
    %c0_0 = arith.constant 0 : index
    %0 = vector.load %arg1[%c0, %c0_0] : memref<4x128xf32, #tpu.memory_space<vmem>>, vector<4x128xf32>
    %c0_1 = arith.constant 0 : index
    %c0_2 = arith.constant 0 : index
    %1 = vector.load %arg2[%c0_1, %c0_2] : memref<1x128xf32, #tpu.memory_space<vmem>>, vector<1x128xf32>
    %2 = vector.broadcast %1 : vector<1x128xf32> to vector<4x128xf32>
    %3 = arith.subf %0, %2 : vector<4x128xf32>
    %c0_3 = arith.constant 0 : index
    %c0_4 = arith.constant 0 : index
    %4 = vector.load %arg3[%c0_3, %c0_4] : memref<1x128xf32, #tpu.memory_space<vmem>>, vector<1x128xf32>
    %5 = vector.broadcast %4 : vector<1x128xf32> to vector<4x128xf32>
    %6 = arith.mulf %3, %5 : vector<4x128xf32>
    %c0_5 = arith.constant 0 : index
    %c0_6 = arith.constant 0 : index
    %7 = vector.load %arg4[%c0_5, %c0_6] : memref<4x128xf32, #tpu.memory_space<vmem>>, vector<4x128xf32>
    tpu.vector_store %arg4[%c0_5, %c0_6], %6 {strides = array<i32>} : memref<4x128xf32, #tpu.memory_space<vmem>>, vector<4x128xf32>,
    return
  }
  func.func @transform_0(%arg0: i32) -> (i32, i32) {
    %c0_i32 = arith.constant 0 : i32
    %c0_i32_0 = arith.constant 0 : i32
    return %arg0, %c0_i32 : i32, i32
  }
  func.func @transform_1(%arg0: i32) -> (i32, i32) {
    %c0_i32 = arith.constant 0 : i32
    %c0_i32_0 = arith.constant 0 : i32
    %c0_i32_1 = arith.constant 0 : i32
    return %c0_i32, %c0_i32_0 : i32, i32
  }
  func.func @transform_2(%arg0: i32) -> (i32, i32) {
    %c0_i32 = arith.constant 0 : i32
    %c0_i32_0 = arith.constant 0 : i32
    %c0_i32_1 = arith.constant 0 : i32
    return %c0_i32, %c0_i32_0 : i32, i32
  }
  func.func @transform_3(%arg0: i32) -> (i32, i32) {
    %c0_i32 = arith.constant 0 : i32
    %c0_i32_0 = arith.constant 0 : i32
    return %arg0, %c0_i32 : i32, i32
  }
}

</mosaic_0001>

<bundles_post_ra>
// kernel: tpu_custom_call.1
= control target key start
LH: loop header
LB: loop body
LE: loop exit
PB: predicated region body
PF: predicated region fallthrough
CT: control target
= control target key end

     0   :  { %8 = vsyncpa [#allocation3], 0  ;;  %s164_s0 = inlined_call_operand.hbm [shape: f32[4,128], index: 0, kind: input, shape index: {}]   ;;  %s165_s1 = inlined_call_operand.vmem [shape: f32[1,128], index: 1, kind: input, shape index: {}]   ;;  %s166_s2 = inlined_call_operand.vmem [shape: f32[1,128], index: 2, kind: input, shape index: {}]   ;;  %s167_s3 = inlined_call_operand.hbm [shape: f32[4,128], index: 3, kind: output, shape index: {}]  }
   0x1   :  { %9 = vsyncpa [#allocation4], 0  ;;  %s112_s12 = smov [#allocation2]   ;;  %s64_s16 = scalar_lea.hbm %s164_s0, 64 }
   0x2   :  { %s16_s13 = sshll.u32 %s112_s12, 4  ;;  %p65_p0 = scmp.ne.s32.totalorder %s164_s0, %s64_s16  ;;  %s17_s13 = int_to_ptr.vmem [resolvable:$true] %s16_s13 }
   0x3   :  { %p68_p1 = scmp.lt.u32.totalorder %s64_s16, %s164_s0 }
   0x5   :  { %p70_p2 = pnand %p68_p1, %p65_p0 }
   0x7   :  { %73 = shalt.err (!%p70_p2)
}
   0x8   :  { %s74_s21 = scalar_lea.vmem %s17_s13, 64  ;;  %p79_p4 = scmp.lt.s32.totalorder %s17_s13, %s17_s13 }
   0x9   :  { %p75_p3 = scmp.ne.s32.totalorder %s17_s13, %s74_s21  ;;  %p80_p5 = scmp.lt.s32.totalorder %s74_s21, %s74_s21 }
   0xb   :  { %p81_p6 = por %p80_p5, %p79_p4 }
   0xd   :  { %p82_p7 = pnand %p81_p6, %p75_p3 }
   0xf   :  { %85 = shalt.err (!%p82_p7)
}
  0x10   :  { %19 = dma.hbm_to_vmem [thread:$0]  %s164_s0, 64, %s17_s13, [#allocation3]  }
  0x11   :  { %108 = dma.done.wait [#allocation3], 64  }
  0x12   :  { %109 = vsyncadd [#allocation3], 4294967232  ;;  %s113_s24 = smov [#allocation5]   ;;  %v27_v0 = vld [vmem:[#allocation2] sm:$0xf] }
  0x13   :  { %s51_s25 = sshll.u32 %s113_s24, 4  ;;  %v60_v1 = vld [vmem:[%s165_s1] ss:$0 sm:$0xff]  ;;  %s52_s25 = int_to_ptr.vmem [resolvable:$true] %s51_s25 }
  0x14   :  { %v61_v2 = vld [vmem:[%s166_s2] ss:$0 sm:$0xff]  ;;  %v35_v3 = vsub.f32 %v27_v0, %v60_v1  ;;  %s86_s30 = scalar_lea.vmem %s52_s25, 64  ;;  %p91_p9 = scmp.lt.s32.totalorder %s52_s25, %s52_s25 }
  0x15   :  { %p87_p8 = scmp.ne.s32.totalorder %s52_s25, %s86_s30  ;;  %p92_p10 = scmp.lt.s32.totalorder %s86_s30, %s86_s30 }
  0x16   :  { %v43_v4 = vmul.f32 %v61_v2, %v35_v3 }
  0x17   :  { %p93_p11 = por %p92_p10, %p91_p9 }
  0x18   :  { %44 = vst [vmem:[#allocation5] sm:$0xf] %v43_v4 }
  0x19   :  { %p94_p12 = pnand %p93_p11, %p87_p8 }
  0x1b   :  { %97 = shalt.err (!%p94_p12)
}
  0x1c   :  { %s98_s5 = scalar_lea.hbm %s167_s3, 64 }
  0x1d   :  { %p99_p13 = scmp.ne.s32.totalorder %s167_s3, %s98_s5  ;;  %p102_p0 = scmp.lt.u32.totalorder %s98_s5, %s167_s3 }
  0x1f   :  { %p104_p1 = pnand %p102_p0, %p99_p13 }
  0x21   :  { %107 = shalt.err (!%p104_p1)
}
  0x22   :  { %54 = dma.vmem_to_hbm [thread:$0]  %s52_s25, 64, %s167_s3, [#allocation4]  }
  0x23   :  { %110 = dma.done.wait [#allocation4], 64  }
  0x24   :  { %111 = vsyncadd [#allocation4], 4294967232 }
  0x25   :  { %58 = vsyncpa [#allocation3], 1 }
  0x26   :  { %59 = vsyncpa [#allocation4], 1 }

</bundles_post_ra>
